<compile_context>
chip_gen: v7x
topology: tpu7x:2x2x1
jax: 0.10.0
libtpu: 0.0.40
codegen_flags: <defaults>
</compile_context>

<pallas_src>
import jax
import jax.numpy as jnp
from jax.experimental import pallas as pl
from jax.experimental.pallas import tpu as pltpu


# -----------------------------------------------------------------------------
# Kernels
# -----------------------------------------------------------------------------
def tnet_conv_pool_kernel(x_ref, w1_ref, b1_ref, w2_ref, b2_ref, w3_ref, b3_ref,
                          pooled_ref):
    """conv1/conv2/conv3 (+folded BN) + ReLU + max-pool for TB batch elements."""
    tb, k, n = x_ref.shape
    x = x_ref[...]                                     # (TB, k, N) f32

    # conv1 as k VPU broadcast-FMAs (contraction depth k is tiny; keep the MXU
    # free and avoid transposing the NCL input on the host).
    w1 = w1_ref[...]                                   # (k, 64)
    h = b1_ref[...][None]                              # (1, 1, 64)
    for ki in range(k):                                # unrolled at trace time
        h = h + x[:, ki, :, None] * w1[ki:ki + 1, :][None]
    h = jnp.maximum(h, 0.0).reshape(tb * n, -1)        # (TB*N, 64) f32

    # conv2 (+folded BN) + ReLU on the MXU, M = TB*N.
    h = jnp.maximum(
        jnp.dot(h, w2_ref[...], preferred_element_type=jnp.float32)
        + b2_ref[...], 0.0)                            # (TB*N, 128) f32

    # conv3 (+folded BN) + ReLU: bf16 operands, f32 accumulation.
    h = jnp.maximum(
        jnp.dot(h.astype(jnp.bfloat16), w3_ref[...],
                preferred_element_type=jnp.float32)
        + b3_ref[...], 0.0)                            # (TB*N, 1024) f32

    # MaxPool1d over all N points of each batch element.
    pooled_ref[...] = jnp.max(h.reshape(tb, n, -1), axis=1)   # (TB, 1024)


def tnet_fc_kernel(pooled_ref, wf1_ref, bf1_ref, wf2_ref, bf2_ref, wf3_ref,
                   bf3_ref, out_ref):
    """fc1/fc2 (+folded BN) + ReLU and fc3, run once on the whole batch."""
    p = pooled_ref[...]                                # (B, 1024) f32
    f = jnp.maximum(
        jnp.dot(p.astype(jnp.bfloat16), wf1_ref[...],
                preferred_element_type=jnp.float32) + bf1_ref[...], 0.0)
    f = jnp.maximum(
        jnp.dot(f.astype(jnp.bfloat16), wf2_ref[...],
                preferred_element_type=jnp.float32) + bf2_ref[...], 0.0)
    # fc3: no BN, no ReLU -> (B, k*k)
    out_ref[...] = (
        jnp.dot(f, wf3_ref[...], preferred_element_type=jnp.float32)
        + bf3_ref[...])


# -----------------------------------------------------------------------------
# Parameters
# -----------------------------------------------------------------------------
def make_params(key, k=3):
    """Deterministic synthetic f32 parameters; BN (inference stats) folded in."""
    eps = 1e-5
    dims = [(k, 64), (64, 128), (128, 1024), (1024, 512), (512, 256), (256, k * k)]
    keys = jax.random.split(key, len(dims))
    params = []
    for kk, (fi, fo) in zip(keys, dims):
        kw, kb = jax.random.split(kk)
        w = jax.random.normal(kw, (fi, fo), jnp.float32) * 0.05
        b = jax.random.normal(kb, (1, fo), jnp.float32) * 0.05
        params.append((w, b))
    # Fold BN (gamma=1, beta=0, running_mean=0, running_var=1) into layers 0..4.
    s = 1.0 / jnp.sqrt(1.0 + eps)
    folded = []
    for i, (w, b) in enumerate(params):
        folded.append((w * s, b * s) if i < 5 else (w, b))
    return folded


def _prepare_kernel_params(params):
    """Split into conv/fc groups; cast the large weights to bf16."""
    (w1, b1), (w2, b2), (w3, b3), (wf1, bf1), (wf2, bf2), (wf3, bf3) = params
    conv_p = (w1, b1, w2, b2, w3.astype(jnp.bfloat16), b3)
    fc_p = (wf1.astype(jnp.bfloat16), bf1, wf2.astype(jnp.bfloat16), bf2, wf3, bf3)
    return conv_p, fc_p


def _choose_tb(batch, n_points, max_points=2048):
    """Largest divisor of `batch` whose TB*N stays under the VMEM budget.

    ~5 KB of f32 activations per point -> 2048 points ~= 10 MB, comfortably
    inside the 32 MiB scoped-VMEM default on every generation (incl. v7x).
    """
    cap = max(1, max_points // max(n_points, 1))
    tb = 1
    for d in range(1, min(batch, cap) + 1):
        if batch % d == 0:
            tb = d
    return tb


# -----------------------------------------------------------------------------
# Forward
# -----------------------------------------------------------------------------
def tnet_forward(x, params, k=3, max_points_per_step=2048):
    """x: (B, k, N) float32, the PyTorch NCL input layout (no host transpose)."""
    B, kk, N = x.shape
    assert kk == k
    conv_p, fc_p = _prepare_kernel_params(params)

    TB = _choose_tb(B, N, max_points_per_step)
    grid = (B // TB,)

    # ---- Stage 1: convs + max-pool, batch tiled in blocks of TB ----
    pooled = pl.pallas_call(
        tnet_conv_pool_kernel,
        out_shape=jax.ShapeDtypeStruct((B, 1024), jnp.float32),
        grid_spec=pltpu.PrefetchScalarGridSpec(
            num_scalar_prefetch=0,
            grid=grid,
            in_specs=[pl.BlockSpec((TB, k, N), lambda b: (b, 0, 0))]
                     + [pl.BlockSpec(p.shape, lambda b: (0, 0)) for p in conv_p],
            out_specs=pl.BlockSpec((TB, 1024), lambda b: (b, 0)),
        ),
        compiler_params=pltpu.CompilerParams(
            dimension_semantics=("parallel",),
            vmem_limit_bytes=32 * 1024 * 1024),
    )(x, *conv_p)

    # ---- Stage 2: FC tail once over the whole pooled batch (M = B) ----
    # TODO(synk): for very large B, tile this grid over the batch as well.
    out_flat = pl.pallas_call(
        tnet_fc_kernel,
        out_shape=jax.ShapeDtypeStruct((B, k * k), jnp.float32),
        grid_spec=pltpu.PrefetchScalarGridSpec(
            num_scalar_prefetch=0,
            grid=(1,),
            in_specs=[pl.BlockSpec((B, 1024), lambda i: (0, 0))]
                     + [pl.BlockSpec(p.shape, lambda i: (0, 0)) for p in fc_p],
            out_specs=pl.BlockSpec((B, k * k), lambda i: (0, 0)),
        ),
        compiler_params=pltpu.CompilerParams(
            dimension_semantics=("arbitrary",)),
    )(pooled, *fc_p)

    # Tiny glue: reshape to (B, k, k) and add identity (torch.eye repeated).
    return out_flat.reshape(B, k, k) + jnp.eye(k, dtype=jnp.float32)


# -----------------------------------------------------------------------------
# Pure-JAX reference (full f32) for verification
# -----------------------------------------------------------------------------
def tnet_reference(x, params, k=3):
    xt = jnp.transpose(x, (0, 2, 1))  # (B, N, k)
    h = xt
    for i in range(3):
        w, b = params[i]
        h = jax.nn.relu(h @ w + b)
    pooled = jnp.max(h, axis=1)       # (B, 1024)
    f = pooled
    for i in range(3, 5):
        w, b = params[i]
        f = jax.nn.relu(f @ w + b)
    w, b = params[5]
    out = f @ w + b
    return out.reshape(-1, k, k) + jnp.eye(k, dtype=jnp.float32)


if __name__ == "__main__":
    key = jax.random.PRNGKey(0)
    k_in, k_par = jax.random.split(key)

    B, K, N = 2, 3, 16  # batch=2, k=3 (xyz), 16 points
    x = jax.random.normal(k_in, (B, K, N), jnp.float32)
    params = make_params(k_par, k=K)

    out = jax.block_until_ready(tnet_forward(x, params, k=K))
    ref = tnet_reference(x, params, k=K)

    assert out.shape == (B, K, K)
    # bf16 weights on the large matmuls -> loosened tolerance.
    assert jnp.allclose(out, ref, atol=1e-2, rtol=1e-2), "mismatch vs reference"

    print("KERNEL_OK")
</pallas_src>

<mosaic_0001>
module attributes {stable_mosaic.version = 11 : i64} {
  func.func @tnet_conv_pool_kernel(%arg0: i32, %arg1: memref<2x3x16xf32, #tpu.memory_space<vmem>>, %arg2: memref<3x64xf32, #tpu.memory_space<vmem>>, %arg3: memref<1x64xf32, #tpu.memory_space<vmem>>, %arg4: memref<64x128xf32, #tpu.memory_space<vmem>>, %arg5: memref<1x128xf32, #tpu.memory_space<vmem>>, %arg6: memref<128x1024xbf16, #tpu.memory_space<vmem>>, %arg7: memref<1x1024xf32, #tpu.memory_space<vmem>>, %arg8: memref<2x1024xf32, #tpu.memory_space<vmem>>) attributes {dimension_semantics = [#tpu.dimension_semantics<parallel>], iteration_bounds = array<i64: 1>, scalar_prefetch = 0 : i64, scratch_operands = 0 : i64, tpu.core_type = #tpu.core_type<tc>, window_params = [{transform_indices = @transform_0, window_bounds = array<i64: 2, 3, 16>}, {pipeline_mode = #tpu.pipeline_mode<synchronous>, transform_indices = @transform_1, window_bounds = array<i64: 3, 64>}, {pipeline_mode = #tpu.pipeline_mode<synchronous>, transform_indices = @transform_2, window_bounds = array<i64: 1, 64>}, {pipeline_mode = #tpu.pipeline_mode<synchronous>, transform_indices = @transform_3, window_bounds = array<i64: 64, 128>}, {pipeline_mode = #tpu.pipeline_mode<synchronous>, transform_indices = @transform_4, window_bounds = array<i64: 1, 128>}, {pipeline_mode = #tpu.pipeline_mode<synchronous>, transform_indices = @transform_5, window_bounds = array<i64: 128, 1024>}, {pipeline_mode = #tpu.pipeline_mode<synchronous>, transform_indices = @transform_6, window_bounds = array<i64: 1, 1024>}, {transform_indices = @transform_7, window_bounds = array<i64: 2, 1024>}]} {
    %c0 = arith.constant 0 : index
    %c0_0 = arith.constant 0 : index
    %c0_1 = arith.constant 0 : index
    %0 = vector.load %arg1[%c0, %c0_0, %c0_1] : memref<2x3x16xf32, #tpu.memory_space<vmem>>, vector<2x3x16xf32>
    %c0_2 = arith.constant 0 : index
    %c0_3 = arith.constant 0 : index
    %1 = vector.load %arg2[%c0_2, %c0_3] : memref<3x64xf32, #tpu.memory_space<vmem>>, vector<3x64xf32>
    %c0_4 = arith.constant 0 : index
    %c0_5 = arith.constant 0 : index
    %2 = vector.load %arg3[%c0_4, %c0_5] : memref<1x64xf32, #tpu.memory_space<vmem>>, vector<1x64xf32>
    %3 = vector.shape_cast %2 : vector<1x64xf32> to vector<1x1x64xf32>
    %4 = vector.extract_strided_slice %0 {offsets = [0, 0, 0], sizes = [2, 1, 16], strides = [1, 1, 1]} : vector<2x3x16xf32> to vector<2x1x16xf32>
    %5 = vector.shape_cast %4 : vector<2x1x16xf32> to vector<2x16xf32>
    %6 = vector.shape_cast %5 : vector<2x16xf32> to vector<2x16x1xf32>
    %7 = vector.extract_strided_slice %1 {offsets = [0, 0], sizes = [1, 64], strides = [1, 1]} : vector<3x64xf32> to vector<1x64xf32>
    %8 = vector.shape_cast %7 : vector<1x64xf32> to vector<1x1x64xf32>
    %9 = vector.broadcast %6 : vector<2x16x1xf32> to vector<2x16x64xf32>
    %10 = vector.broadcast %8 : vector<1x1x64xf32> to vector<2x16x64xf32>
    %11 = arith.mulf %9, %10 : vector<2x16x64xf32>
    %12 = vector.broadcast %3 : vector<1x1x64xf32> to vector<2x16x64xf32>
    %13 = arith.addf %12, %11 : vector<2x16x64xf32>
    %14 = vector.extract_strided_slice %0 {offsets = [0, 1, 0], sizes = [2, 1, 16], strides = [1, 1, 1]} : vector<2x3x16xf32> to vector<2x1x16xf32>
    %15 = vector.shape_cast %14 : vector<2x1x16xf32> to vector<2x16xf32>
    %16 = vector.shape_cast %15 : vector<2x16xf32> to vector<2x16x1xf32>
    %17 = vector.extract_strided_slice %1 {offsets = [1, 0], sizes = [1, 64], strides = [1, 1]} : vector<3x64xf32> to vector<1x64xf32>
    %18 = vector.shape_cast %17 : vector<1x64xf32> to vector<1x1x64xf32>
    %19 = vector.broadcast %16 : vector<2x16x1xf32> to vector<2x16x64xf32>
    %20 = vector.broadcast %18 : vector<1x1x64xf32> to vector<2x16x64xf32>
    %21 = arith.mulf %19, %20 : vector<2x16x64xf32>
    %22 = arith.addf %13, %21 : vector<2x16x64xf32>
    %23 = vector.extract_strided_slice %0 {offsets = [0, 2, 0], sizes = [2, 1, 16], strides = [1, 1, 1]} : vector<2x3x16xf32> to vector<2x1x16xf32>
    %24 = vector.shape_cast %23 : vector<2x1x16xf32> to vector<2x16xf32>
    %25 = vector.shape_cast %24 : vector<2x16xf32> to vector<2x16x1xf32>
    %26 = vector.extract_strided_slice %1 {offsets = [2, 0], sizes = [1, 64], strides = [1, 1]} : vector<3x64xf32> to vector<1x64xf32>
    %27 = vector.shape_cast %26 : vector<1x64xf32> to vector<1x1x64xf32>
    %28 = vector.broadcast %25 : vector<2x16x1xf32> to vector<2x16x64xf32>
    %29 = vector.broadcast %27 : vector<1x1x64xf32> to vector<2x16x64xf32>
    %30 = arith.mulf %28, %29 : vector<2x16x64xf32>
    %31 = arith.addf %22, %30 : vector<2x16x64xf32>
    %cst = arith.constant 0.000000e+00 : f32
    %32 = vector.broadcast %cst : f32 to vector<2x16x64xf32>
    %33 = arith.maximumf %31, %32 : vector<2x16x64xf32>
    %34 = vector.shape_cast %33 : vector<2x16x64xf32> to vector<32x64xf32>
    %c0_6 = arith.constant 0 : index
    %c0_7 = arith.constant 0 : index
    %35 = vector.load %arg4[%c0_6, %c0_7] : memref<64x128xf32, #tpu.memory_space<vmem>>, vector<64x128xf32>
    %cst_8 = arith.constant dense<0.000000e+00> : vector<32x128xf32>
    %36 = tpu.matmul %34, %35, %cst_8 {dimension_numbers = #tpu.dot_dimension_numbers<[1], [0], [0], [1], [0, 0, 1, 1], [], []>} : vector<32x64xf32>, vector<64x128xf32>, vector<32x128xf32> -> vector<32x128xf32>
    %c0_9 = arith.constant 0 : index
    %c0_10 = arith.constant 0 : index
    %37 = vector.load %arg5[%c0_9, %c0_10] : memref<1x128xf32, #tpu.memory_space<vmem>>, vector<1x128xf32>
    %38 = vector.broadcast %37 : vector<1x128xf32> to vector<32x128xf32>
    %39 = arith.addf %36, %38 : vector<32x128xf32>
    %cst_11 = arith.constant 0.000000e+00 : f32
    %40 = vector.broadcast %cst_11 : f32 to vector<32x128xf32>
    %41 = arith.maximumf %39, %40 : vector<32x128xf32>
    %42 = arith.truncf %41 : vector<32x128xf32> to vector<32x128xbf16>
    %c0_12 = arith.constant 0 : index
    %c0_13 = arith.constant 0 : index
    %43 = vector.load %arg6[%c0_12, %c0_13] : memref<128x1024xbf16, #tpu.memory_space<vmem>>, vector<128x1024xbf16>
    %cst_14 = arith.constant dense<0.000000e+00> : vector<32x1024xf32>
    %44 = tpu.matmul %42, %43, %cst_14 {dimension_numbers = #tpu.dot_dimension_numbers<[1], [0], [0], [1], [0, 0, 1, 1], [], []>} : vector<32x128xbf16>, vector<128x1024xbf16>, vector<32x1024xf32> -> vector<32x1024xf32>
    %c0_15 = arith.constant 0 : index
    %c0_16 = arith.constant 0 : index
    %45 = vector.load %arg7[%c0_15, %c0_16] : memref<1x1024xf32, #tpu.memory_space<vmem>>, vector<1x1024xf32>
    %46 = vector.broadcast %45 : vector<1x1024xf32> to vector<32x1024xf32>
    %47 = arith.addf %44, %46 : vector<32x1024xf32>
    %cst_17 = arith.constant 0.000000e+00 : f32
    %48 = vector.broadcast %cst_17 : f32 to vector<32x1024xf32>
    %49 = arith.maximumf %47, %48 : vector<32x1024xf32>
    %50 = vector.shape_cast %49 : vector<32x1024xf32> to vector<2x16x1024xf32>
    %cst_18 = arith.constant dense<0xFF800000> : vector<2x1024xf32>
    %51 = vector.multi_reduction <maximumf>, %50, %cst_18 [1] : vector<2x16x1024xf32> to vector<2x1024xf32>
    %c0_19 = arith.constant 0 : index
    %c0_20 = arith.constant 0 : index
    %52 = vector.load %arg8[%c0_19, %c0_20] : memref<2x1024xf32, #tpu.memory_space<vmem>>, vector<2x1024xf32>
    tpu.vector_store %arg8[%c0_19, %c0_20], %51 {strides = array<i32>} : memref<2x1024xf32, #tpu.memory_space<vmem>>, vector<2x1024xf32>,
    return
  }
  func.func @transform_0(%arg0: i32) -> (i32, i32, i32) {
    %c0_i32 = arith.constant 0 : i32
    %c0_i32_0 = arith.constant 0 : i32
    %c0_i32_1 = arith.constant 0 : i32
    return %arg0, %c0_i32, %c0_i32_0 : i32, i32, i32
  }
  func.func @transform_1(%arg0: i32) -> (i32, i32) {
    %c0_i32 = arith.constant 0 : i32
    %c0_i32_0 = arith.constant 0 : i32
    %c0_i32_1 = arith.constant 0 : i32
    return %c0_i32, %c0_i32_0 : i32, i32
  }
  func.func @transform_2(%arg0: i32) -> (i32, i32) {
    %c0_i32 = arith.constant 0 : i32
    %c0_i32_0 = arith.constant 0 : i32
    %c0_i32_1 = arith.constant 0 : i32
    return %c0_i32, %c0_i32_0 : i32, i32
  }
  func.func @transform_3(%arg0: i32) -> (i32, i32) {
    %c0_i32 = arith.constant 0 : i32
    %c0_i32_0 = arith.constant 0 : i32
    %c0_i32_1 = arith.constant 0 : i32
    return %c0_i32, %c0_i32_0 : i32, i32
  }
  func.func @transform_4(%arg0: i32) -> (i32, i32) {
    %c0_i32 = arith.constant 0 : i32
    %c0_i32_0 = arith.constant 0 : i32
    %c0_i32_1 = arith.constant 0 : i32
    return %c0_i32, %c0_i32_0 : i32, i32
  }
  func.func @transform_5(%arg0: i32) -> (i32, i32) {
    %c0_i32 = arith.constant 0 : i32
    %c0_i32_0 = arith.constant 0 : i32
    %c0_i32_1 = arith.constant 0 : i32
    return %c0_i32, %c0_i32_0 : i32, i32
  }
  func.func @transform_6(%arg0: i32) -> (i32, i32) {
    %c0_i32 = arith.constant 0 : i32
    %c0_i32_0 = arith.constant 0 : i32
    %c0_i32_1 = arith.constant 0 : i32
    return %c0_i32, %c0_i32_0 : i32, i32
  }
  func.func @transform_7(%arg0: i32) -> (i32, i32) {
    %c0_i32 = arith.constant 0 : i32
    %c0_i32_0 = arith.constant 0 : i32
    return %arg0, %c0_i32 : i32, i32
  }
}

</mosaic_0001>

<bundles_post_ra>
// kernel: tpu_custom_call.1
= control target key start
LH: loop header
LB: loop body
LE: loop exit
PB: predicated region body
PF: predicated region fallthrough
CT: control target
= control target key end

     0   :  { %12 = vsyncpa [#allocation3], 0  ;;  %s1658_s0 = inlined_call_operand.vmem [shape: f32[2,3,16], index: 0, kind: input, shape index: {}]   ;;  %s1659_s1 = inlined_call_operand.vmem [shape: f32[3,64], index: 1, kind: input, shape index: {}]   ;;  %s1660_s2 = inlined_call_operand.vmem [shape: f32[1,64], index: 2, kind: input, shape index: {}]   ;;  %s1661_s3 = inlined_call_operand.hbm [shape: f32[64,128], index: 3, kind: input, shape index: {}]   ;;  %s1662_s4 = inlined_call_operand.vmem [shape: f32[1,128], index: 4, kind: input, shape index: {}]   ;;  %s1663_s5 = inlined_call_operand.hbm [shape: bf16[128,1024], index: 5, kind: input, shape index: {}]   ;;  %s1664_s6 = inlined_call_operand.vmem [shape: f32[1,1024], index: 6, kind: input, shape index: {}]   ;;  %s1665_s7 = inlined_call_operand.hbm [shape: f32[2,1024], index: 7, kind: output, shape index: {}]  }
   0x1   :  { %13 = vsyncpa [#allocation6], 0 }
   0x2   :  { %14 = vsyncpa [#allocation4], 0  ;;  %s1398_s24 = smov [#allocation2]   ;;  %s1326_s28 = scalar_lea.hbm %s1661_s3, 1024 }
   0x3   :  { %s26_s25 = sshll.u32 %s1398_s24, 4  ;;  %p1327_p0 = scmp.ne.s32.totalorder %s1661_s3, %s1326_s28  ;;  %s27_s25 = int_to_ptr.vmem [resolvable:$true] %s26_s25 }
   0x4   :  { %p1330_p1 = scmp.lt.u32.totalorder %s1326_s28, %s1661_s3 }
   0x6   :  { %p1332_p2 = pnand %p1330_p1, %p1327_p0 }
   0x8   :  { %1335 = shalt.err (!%p1332_p2)
}
   0x9   :  { %s1336_s10 = scalar_lea.vmem %s27_s25, 1024  ;;  %p1341_p4 = scmp.lt.s32.totalorder %s27_s25, %s27_s25 }
   0xa   :  { %p1337_p3 = scmp.ne.s32.totalorder %s27_s25, %s1336_s10  ;;  %p1342_p5 = scmp.lt.s32.totalorder %s1336_s10, %s1336_s10 }
   0xc   :  { %p1343_p6 = por %p1342_p5, %p1341_p4 }
   0xe   :  { %p1344_p7 = pnand %p1343_p6, %p1337_p3 }
  0x10   :  { %1347 = shalt.err (!%p1344_p7)
}
  0x11   :  { %s1399_s11 = smov 128   ;;  %s1400_s12 = smov 8  }
  0x12   :  { %32 = dma.hbm_to_vmem [thread:$0]  %s1661_s3, 1024, %s27_s25, [#allocation3], %s1399_s11, %s1399_s11, %s1400_s12  }
  0x13   :  { %s1401_s15 = smov [#allocation5]   ;;  %s1348_s19 = scalar_lea.hbm %s1663_s5, 8192 }
  0x14   :  { %s40_s16 = sshll.u32 %s1401_s15, 4  ;;  %p1349_p8 = scmp.ne.s32.totalorder %s1663_s5, %s1348_s19  ;;  %s41_s16 = int_to_ptr.vmem [resolvable:$true] %s40_s16 }
  0x15   :  { %p1352_p9 = scmp.lt.u32.totalorder %s1348_s19, %s1663_s5 }
  0x17   :  { %p1354_p10 = pnand %p1352_p9, %p1349_p8 }
  0x19   :  { %1357 = shalt.err (!%p1354_p10)
}
  0x1a   :  { %s1358_s24 = scalar_lea.vmem %s41_s16, 8192  ;;  %p1363_p12 = scmp.lt.s32.totalorder %s41_s16, %s41_s16 }
  0x1b   :  { %p1359_p11 = scmp.ne.s32.totalorder %s41_s16, %s1358_s24  ;;  %p1364_p13 = scmp.lt.s32.totalorder %s1358_s24, %s1358_s24 }
  0x1d   :  { %p1365_p0 = por %p1364_p13, %p1363_p12 }
  0x1f   :  { %p1366_p1 = pnand %p1365_p0, %p1359_p11 }
  0x21   :  { %1369 = shalt.err (!%p1366_p1)
}
  0x22   :  { %s1402_s3 = smov 512   ;;  %s1403_s25 = smov 32  }
  0x23   :  { %46 = dma.hbm_to_vmem [thread:$0]  %s1663_s5, 8192, %s41_s16, [#allocation6], %s1402_s3, %s1402_s3, %s1403_s25  }
  0x24   :  { %1392 = dma.done.wait [#allocation3], 1024  }
  0x25   :  { %1393 = vsyncadd [#allocation3], 4294966272 }
  0x26   :  { %1394 = dma.done.wait [#allocation6], 8192  }
  0x27   :  { %1395 = vsyncadd [#allocation6], 4294959104  ;;  %v60_v0 = vlaneseq  ;;  %v56_v4 = vld [vmem:[%s1658_s0] sm:$0x7]  ;;  %v172_v5 = vld [vmem:[#allocation2] sm:$0xff]  ;;  %vm187_vm0 = vcmask 523264  }
  0x28   :  { %v173_v8 = vld [vmem:[#allocation2 + $0x8] sm:$0xff]  ;;  %v174_v10 = vld [vmem:[#allocation2 + $0x10] sm:$0xff]  ;;  %v175_v11 = vld [vmem:[#allocation2 + $0x18] sm:$0xff]  ;;  %vm1162_vm1 = vcmask 1041409   ;;  %vm1164_vm2 = vcmask 1043459   ;;  %vm1166_vm3 = vcmask 1045509  }
  0x29   :  { %v1471_v1 = vshrl.u32 %v60_v0, 7  ;;  %v1301_v9 = vpack.c.bf16 %v173_v8, %v172_v5  ;;  %v1305_v13 = vpack.c.bf16 %v175_v11, %v174_v10  ;;  %v176_v14 = vld [vmem:[#allocation2 + $0x20] sm:$0xff]  ;;  %v177_v15 = vld [vmem:[#allocation2 + $0x28] sm:$0xff]  ;;  %v178_v18 = vld [vmem:[#allocation2 + $0x30] sm:$0xff]  ;;  %vm1168_vm4 = vcmask 1047559  }
  0x2a   :  { %v1309_v16 = vpack.c.bf16 %v177_v15, %v176_v14  ;;  %v179_v19 = vld [vmem:[#allocation2 + $0x38] sm:$0xff]  ;;  %v291_v24 = vld [vmem:[#allocation5] sm:$0xff]  ;;  %v1493_v26 = vld [vmem:[#allocation5 + $0x8] sm:$0xff] }
  0x2b   :  { %v1474_v2 = vsub.s32 1, %v1471_v1  ;;  %v1477_v3 = vsub.s32 0, %v1471_v1  ;;  %v1485_v12 = vsub.s32 2, %v1471_v1  ;;  %1302 = vmatprep.subr.bf16.mxu0 %v1301_v9  ;;  %v57_v20 = vld [vmem:[%s1658_s0 + $0x4] sm:$0x7]  ;;  %v1313_v21 = vpack.c.bf16 %v179_v19, %v178_v18  ;;  %v295_v25 = vld [vmem:[#allocation5 + $0x20] sm:$0xff] }
  0x2c   :  { %1304 = vmatpush3.bf16.msra.mxu0 %v1301_v9  ;;  %v1204_v28 = vcombine.high %v291_v24, %v295_v25  ;;  %v1496_v29 = vld [vmem:[#allocation5 + $0x28] sm:$0xff]  ;;  %v1203_v30 = vcombine.low %v291_v24, %v295_v25  ;;  %v299_v31 = vld [vmem:[#allocation5 + $0x40] sm:$0xff]  ;;  %v58_v56 = vld [vmem:[%s1659_s1] sm:$0x7] }
  0x2d   :  { %v103_v6 = vrot.slane %v56_v4, %v1474_v2  ;;  %v63_v7 = vrot.slane %v56_v4, %v1477_v3  ;;  %1306 = vmatprep.subr.bf16.mxu0 %v1305_v13  ;;  %v137_v17 = vrot.slane %v56_v4, %v1485_v12  ;;  %v74_v22 = vrot.slane %v57_v20, %v1477_v3  ;;  %v303_v32 = vld [vmem:[#allocation5 + $0x60] sm:$0xff]  ;;  %v1197_v62 = vld [vmem:[%s1660_s2] ss:$0 sm:$0xff]  ;;  %v300_v19 = vld [vmem:[#allocation5 + $0x48] sm:$0xff] }
  0x2e   :  { %v114_v23 = vrot.slane %v57_v20, %v1474_v2  ;;  %v148_v27 = vrot.slane %v57_v20, %v1485_v12  ;;  %v1205_v33 = vcombine.low %v1493_v26, %v1496_v29  ;;  %v1206_v34 = vcombine.high %v1493_v26, %v1496_v29  ;;  %v307_v36 = vld [vmem:[#allocation5 + $0x80] sm:$0xff]  ;;  %717 = vmatprep.subr.bf16.mxu1 %v1204_v28  ;;  %v304_v20 = vld [vmem:[#allocation5 + $0x68] sm:$0xff] }
  0x2f   :  { %105 = vbcast.lane.b32.xlu1 %v103_v6, 256  ;;  %65 = vbcast.lane.b32.xlu0 %v63_v7, 256  ;;  %v1212_v35 = vcombine.high %v299_v31, %v303_v32  ;;  %v311_v37 = vld [vmem:[#allocation5 + $0xa0] sm:$0xff]  ;;  %v1211_v38 = vcombine.low %v299_v31, %v303_v32  ;;  %v85_v57 = vrot.slane %v58_v56, %v1477_v3  ;;  %v308_v32 = vld [vmem:[#allocation5 + $0x88] sm:$0xff] }
  0x30   :  { %1308 = vmatpush3.bf16.msra.mxu0 %v1305_v13  ;;  %718 = vmatpush1.bf16.msra.mxu1 %v1203_v30  ;;  %v1220_v39 = vcombine.high %v307_v36, %v311_v37  ;;  %v315_v40 = vld [vmem:[#allocation5 + $0xc0] sm:$0xff]  ;;  %v1219_v42 = vcombine.low %v307_v36, %v311_v37  ;;  %v125_v60 = vrot.slane %v58_v56, %v1474_v2  ;;  %v328_v26 = vld [vmem:[#allocation5 + $0x128] sm:$0xff] }
  0x31   :  { %1310 = vmatprep.subr.bf16.mxu0 %v1309_v16  ;;  %719 = vmatprep.subr.bf16.mxu1 %v1212_v35  ;;  %v319_v41 = vld [vmem:[#allocation5 + $0xe0] sm:$0xff]  ;;  %v159_v4 = vrot.slane %v58_v56, %v1485_v12  ;;  %v1214_v28 = vcombine.high %v300_v19, %v304_v20 }
  0x32   :  { %v1228_v43 = vcombine.high %v315_v40, %v319_v41  ;;  %v323_v44 = vld [vmem:[#allocation5 + $0x100] sm:$0xff]  ;;  %v1227_v46 = vcombine.low %v315_v40, %v319_v41 }
  0x33   :  { %109 = vbcast.lane.b32.xlu1 %v103_v6, 264  ;;  %69 = vbcast.lane.b32.xlu0 %v63_v7, 264  ;;  %v327_v45 = vld [vmem:[#allocation5 + $0x120] sm:$0xff] }
  0x34   :  { %1312 = vmatpush3.bf16.msra.mxu0 %v1309_v16  ;;  %720 = vmatpush1.bf16.msra.mxu1 %v1211_v38  ;;  %v1236_v47 = vcombine.high %v323_v44, %v327_v45  ;;  %v331_v48 = vld [vmem:[#allocation5 + $0x140] sm:$0xff]  ;;  %v1235_v50 = vcombine.low %v323_v44, %v327_v45  ;;  %v320_v44 = vld [vmem:[#allocation5 + $0xe8] sm:$0xff] }
  0x35   :  { %1314 = vmatprep.subr.bf16.mxu0 %v1313_v21  ;;  %721 = vmatprep.subr.bf16.mxu1 %v1220_v39  ;;  %v335_v49 = vld [vmem:[#allocation5 + $0x160] sm:$0xff]  ;;  %v1213_v39 = vcombine.low %v300_v19, %v304_v20  ;;  %v298_v20 = vld [vmem:[#allocation5 + $0x38] sm:$0xff] }
  0x36   :  { %v1244_v51 = vcombine.high %v331_v48, %v335_v49  ;;  %v1502_v52 = vld [vmem:[#allocation5 + $0x180] sm:$0xff]  ;;  %v1243_v54 = vcombine.low %v331_v48, %v335_v49 }
  0x37   :  { %143 = vbcast.lane.b32.xlu1 %v137_v17, 264  ;;  %139 = vbcast.lane.b32.xlu0 %v137_v17, 256  ;;  %v1504_v53 = vld [vmem:[#allocation5 + $0x1a0] sm:$0xff] }
  0x38   :  { %1316 = vmatpush3.bf16.msra.mxu0 %v1313_v21  ;;  %722 = vmatpush1.bf16.msra.mxu1 %v1219_v42  ;;  %v1252_v55 = vcombine.high %v1502_v52, %v1504_v53 }
  0x39   :  { %770 = vmatprep.subr.bf16.mxu0 %v1206_v34  ;;  %723 = vmatprep.subr.bf16.mxu1 %v1228_v43  ;;  %v312_v34 = vld [vmem:[#allocation5 + $0xa8] sm:$0xff] }
  0x3a   :  { %v1222_v40 = vcombine.high %v308_v32, %v312_v34  ;;  %v316_v43 = vld [vmem:[#allocation5 + $0xc8] sm:$0xff]  ;;  %v1221_v49 = vcombine.low %v308_v32, %v312_v34  ;;  %v305_v32 = vld [vmem:[#allocation5 + $0x70] sm:$0xff]  ;;  %v302_v34 = vld [vmem:[#allocation5 + $0x58] sm:$0xff] }
  0x3b   :  { %76 = vbcast.lane.b32.xlu0 %v74_v22, 256  ;;  %80 = vbcast.lane.b32.xlu1 %v74_v22, 264  ;;  %v1229_v56 = vcombine.low %v316_v43, %v320_v44 }
  0x3c   :  { %724 = vmatpush1.bf16.msra.mxu1 %v1227_v46 }
  0x3d   :  { %725 = vmatprep.subr.bf16.mxu1 %v1236_v47 }
  0x3f   :  { %116 = vbcast.lane.b32.xlu0 %v114_v23, 256  ;;  %120 = vbcast.lane.b32.xlu1 %v114_v23, 264 }
  0x40   :  { %726 = vmatpush1.bf16.msra.mxu1 %v1235_v50  ;;  %v1230_v50 = vcombine.high %v316_v43, %v320_v44  ;;  %v314_v43 = vld [vmem:[#allocation5 + $0xb8] sm:$0xff] }
  0x41   :  { %727 = vmatprep.subr.bf16.mxu1 %v1244_v51 }
  0x43   :  { %150 = vbcast.lane.b32.xlu0 %v148_v27, 256  ;;  %154 = vbcast.lane.b32.xlu1 %v148_v27, 264 }
  0x44   :  { %728 = vmatpush1.bf16.msra.mxu1 %v1243_v54 }
  0x45   :  { %729 = vmatprep.subr.bf16.mxu1 %v1252_v55  ;;  %v324_v55 = vld [vmem:[#allocation5 + $0x108] sm:$0xff] }
  0xa1   :  { %v106_v58 = vpop.permute.xlu1 %105  ;;  %v66_v59 = vpop.permute.xlu0 %65 }
  0xa2   :  { %v86_v61 = vmul.f32 %v85_v57, %v66_v59  ;;  %v126_v5 = vmul.f32 %v125_v60, %v106_v58  ;;  %v332_v58 = vld [vmem:[#allocation5 + $0x148] sm:$0xff] }
  0xa3   :  { %v336_v59 = vld [vmem:[#allocation5 + $0x168] sm:$0xff] }
  0xa4   :  { %v96_v6 = vadd.f32 %v1197_v62, %v86_v61  ;;  %v1246_v61 = vcombine.high %v332_v58, %v336_v59 }
  0xa5   :  { %v110_v63 = vpop.permute.xlu1 %109  ;;  %v70_v0 = vpop.permute.xlu0 %69 }
  0xa6   :  { %v127_v7 = vmul.f32 %v125_v60, %v110_v63  ;;  %v87_v8 = vmul.f32 %v85_v57, %v70_v0  ;;  %v130_v16 = vadd.f32 %v126_v5, %v96_v6  ;;  %v344_v63 = vld [vmem:[#allocation5 + $0x1a8] sm:$0xff]  ;;  %v1245_v0 = vcombine.low %v332_v58, %v336_v59  ;;  %v325_v59 = vld [vmem:[#allocation5 + $0x110] sm:$0xff] }
  0xa7   :  { %v1251_v6 = vcombine.low %v1502_v52, %v1504_v53 }
  0xa8   :  { %v97_v9 = vadd.f32 %v1197_v62, %v87_v8  ;;  %v351_v8 = vld [vmem:[#allocation5 + $0x1e0] sm:$0xff] }
  0xa9   :  { %v144_v10 = vpop.permute.xlu1 %143  ;;  %v140_v11 = vpop.permute.xlu0 %139  ;;  %730 = vmatpush1.bf16.msra.mxu1 %v1251_v6 }
  0xaa   :  { %v131_v13 = vadd.f32 %v127_v7, %v97_v9  ;;  %v161_v14 = vmul.f32 %v159_v4, %v144_v10  ;;  %v160_v15 = vmul.f32 %v159_v4, %v140_v11  ;;  %v347_v7 = vld [vmem:[#allocation5 + $0x1c0] sm:$0xff]  ;;  %v348_v10 = vld [vmem:[#allocation5 + $0x1c8] sm:$0xff] }
  0xab   :  { %v1260_v9 = vcombine.high %v347_v7, %v351_v8  ;;  %v352_v11 = vld [vmem:[#allocation5 + $0x1e8] sm:$0xff] }
  0xac   :  { %v165_v17 = vadd.f32 %v161_v14, %v131_v13  ;;  %v164_v18 = vadd.f32 %v160_v15, %v130_v16  ;;  %v1261_v13 = vcombine.low %v348_v10, %v352_v11  ;;  %v1262_v14 = vcombine.high %v348_v10, %v352_v11  ;;  %v293_v16 = vld [vmem:[#allocation5 + $0x10] sm:$0xff]  ;;  %v334_v11 = vld [vmem:[#allocation5 + $0x158] sm:$0xff] }
  0xad   :  { %v77_v21 = vpop.permute.xlu0 %76  ;;  %v81_v22 = vpop.permute.xlu1 %80  ;;  %v1259_v15 = vcombine.low %v347_v7, %v351_v8  ;;  %731 = vmatprep.subr.bf16.mxu1 %v1260_v9  ;;  %v333_v9 = vld [vmem:[#allocation5 + $0x150] sm:$0xff] }
  0xae   :  { %v169_v23 = vmax.f32 %v165_v17, 0.0  ;;  %v88_v24 = vmul.f32 %v85_v57, %v77_v21  ;;  %v89_v25 = vmul.f32 %v85_v57, %v81_v22  ;;  %v168_v27 = vmax.f32 %v164_v18, 0.0  ;;  %v297_v17 = vld [vmem:[#allocation5 + $0x30] sm:$0xff]  ;;  %v294_v18 = vld [vmem:[#allocation5 + $0x18] sm:$0xff] }
  0xaf   :  { %v1238_v57 = vcombine.high %v324_v55, %v328_v26  ;;  %732 = vmatpush1.bf16.msra.mxu1 %v1259_v15  ;;  %v1208_v19 = vcombine.high %v293_v16, %v297_v17  ;;  %v1207_v21 = vcombine.low %v293_v16, %v297_v17  ;;  %v1209_v52 = vcombine.low %v294_v18, %v298_v20  ;;  %v337_v10 = vld [vmem:[#allocation5 + $0x170] sm:$0xff] }
  0xb0   :  { %v98_v30 = vadd.f32 %v1197_v62, %v88_v24  ;;  %v99_v31 = vadd.f32 %v1197_v62, %v89_v25  ;;  %1295 = vmatprep.mubr.msk.f32.mxu0 %vm187_vm0, %v168_v27  ;;  %v340_v62 = vld [vmem:[#allocation5 + $0x188] sm:$0xff]  ;;  %v1210_v53 = vcombine.high %v294_v18, %v298_v20  ;;  %v1404_v22 = vmov 0   ;;  %v341_v18 = vld [vmem:[#allocation5 + $0x190] sm:$0xff]  ;;  %v342_v20 = vld [vmem:[#allocation5 + $0x198] sm:$0xff] }
  0xb1   :  { %1296 = vmatmul.mubr.msk.f32.vlgmr.msra.gmra.mrb[0].mxu0 %vm187_vm0, %v169_v23  ;;  %v117_v35 = vpop.permute.xlu0 %116  ;;  %v121_v36 = vpop.permute.xlu1 %120  ;;  %v1253_v5 = vcombine.low %v340_v62, %v344_v63  ;;  %749 = vmatprep.mubr.bf16.mxu1 %v1404_v22  ;;  %v1198_v23 = vld [vmem:[%s1662_s4] ss:$0 sm:$0xff]  ;;  %v1248_v16 = vcombine.high %v333_v9, %v337_v10 }
  0xb2   :  { %v128_v37 = vmul.f32 %v125_v60, %v117_v35  ;;  %v129_v38 = vmul.f32 %v125_v60, %v121_v36  ;;  %771 = vmatpush1.bf16.msra.mxu0 %v1205_v33  ;;  %v1237_v60 = vcombine.low %v324_v55, %v328_v26  ;;  %823 = vmatprep.subr.bf16.mxu1 %v1208_v19  ;;  %v306_v35 = vld [vmem:[#allocation5 + $0x78] sm:$0xff]  ;;  %v345_v19 = vld [vmem:[#allocation5 + $0x1b0] sm:$0xff] }
  0xb3   :  { %772 = vmatprep.subr.bf16.mxu0 %v1214_v28 }
  0xb4   :  { %v132_v41 = vadd.f32 %v128_v37, %v98_v30  ;;  %v133_v42 = vadd.f32 %v129_v38, %v99_v31  ;;  %v301_v30 = vld [vmem:[#allocation5 + $0x50] sm:$0xff] }
  0xb5   :  { %v151_v45 = vpop.permute.xlu0 %150  ;;  %v155_v46 = vpop.permute.xlu1 %154  ;;  %v1216_v38 = vcombine.high %v301_v30, %v305_v32  ;;  %v1215_v44 = vcombine.low %v301_v30, %v305_v32  ;;  %v354_v30 = vld [vmem:[#allocation5 + $0x1f8] sm:$0xff] }
  0xb6   :  { %v162_v47 = vmul.f32 %v159_v4, %v151_v45  ;;  %v163_v48 = vmul.f32 %v159_v4, %v155_v46  ;;  %773 = vmatpush1.bf16.msra.mxu0 %v1213_v39  ;;  %v1254_v4 = vcombine.high %v340_v62, %v344_v63  ;;  %v1218_v39 = vcombine.high %v302_v34, %v306_v35  ;;  %v326_v62 = vld [vmem:[#allocation5 + $0x118] sm:$0xff] }
  0xb7   :  { %774 = vmatprep.subr.bf16.mxu0 %v1222_v40  ;;  %v309_v40 = vld [vmem:[#allocation5 + $0x90] sm:$0xff]  ;;  %v1217_v45 = vcombine.low %v302_v34, %v306_v35  ;;  %v330_v63 = vld [vmem:[#allocation5 + $0x138] sm:$0xff] }
  0xb8   :  { %v166_v51 = vadd.f32 %v162_v47, %v132_v41  ;;  %v167_v54 = vadd.f32 %v163_v48, %v133_v42  ;;  %v313_v41 = vld [vmem:[#allocation5 + $0xb0] sm:$0xff]  ;;  %v310_v42 = vld [vmem:[#allocation5 + $0x98] sm:$0xff]  ;;  %v1242_v8 = vcombine.high %v326_v62, %v330_v63  ;;  %v1241_v15 = vcombine.low %v326_v62, %v330_v63 }
  0xb9   :  { %v1224_v46 = vcombine.high %v309_v40, %v313_v41  ;;  %v1226_v47 = vcombine.high %v310_v42, %v314_v43  ;;  %v317_v48 = vld [vmem:[#allocation5 + $0xd0] sm:$0xff] }
  0xba   :  { %v170_v29 = vmax.f32 %v166_v51, 0.0  ;;  %v171_v33 = vmax.f32 %v167_v54, 0.0  ;;  %775 = vmatpush1.bf16.msra.mxu0 %v1221_v49  ;;  %v321_v49 = vld [vmem:[#allocation5 + $0xf0] sm:$0xff]  ;;  %v322_v51 = vld [vmem:[#allocation5 + $0xf8] sm:$0xff] }
  0xbb   :  { %776 = vmatprep.subr.bf16.mxu0 %v1230_v50  ;;  %v318_v50 = vld [vmem:[#allocation5 + $0xd8] sm:$0xff] }
  0xbc   :  { %1298 = vmatprep.mubr.msk.f32.mxu0 %vm187_vm0, %v170_v29  ;;  %v1223_v29 = vcombine.low %v309_v40, %v313_v41  ;;  %v1234_v58 = vcombine.high %v318_v50, %v322_v51  ;;  %v371_v40 = vsub.s32 3, %v1471_v1 }
  0xbd   :  { %1299 = vmatmul.mubr.msk.f32.gmra.mrb[2].mxu0 %vm187_vm0, %v171_v33  ;;  %v1225_v33 = vcombine.low %v310_v42, %v314_v43 }
  0xbe   :  { %777 = vmatpush1.bf16.msra.mxu0 %v1229_v56  ;;  %802 = vmatprep.mubr.bf16.mxu0 %v1404_v22 }
  0xbf   :  { %778 = vmatprep.subr.bf16.mxu0 %v1238_v57  ;;  %v1232_v57 = vcombine.high %v317_v48, %v321_v49 }
  0xc2   :  { %779 = vmatpush1.bf16.msra.mxu0 %v1237_v60 }
  0xc3   :  { %780 = vmatprep.subr.bf16.mxu0 %v1246_v61  ;;  %v329_v61 = vld [vmem:[#allocation5 + $0x130] sm:$0xff] }
  0xc4   :  { %v1240_v7 = vcombine.high %v325_v59, %v329_v61 }
  0xc6   :  { %781 = vmatpush1.bf16.msra.mxu0 %v1245_v0 }
  0xc7   :  { %782 = vmatprep.subr.bf16.mxu0 %v1254_v4  ;;  %v1231_v4 = vcombine.low %v317_v48, %v321_v49 }
  0xca   :  { %783 = vmatpush1.bf16.msra.mxu0 %v1253_v5  ;;  %v1233_v5 = vcombine.low %v318_v50, %v322_v51 }
  0xcb   :  { %784 = vmatprep.subr.bf16.mxu0 %v1262_v14  ;;  %v1239_v14 = vcombine.low %v325_v59, %v329_v61 }
  0xce   :  { %785 = vmatpush1.bf16.msra.mxu0 %v1261_v13  ;;  %v338_v13 = vld [vmem:[#allocation5 + $0x178] sm:$0xff] }
  0xcf   :  { %876 = vmatprep.subr.bf16.mxu0 %v1210_v53  ;;  %v1250_v17 = vcombine.high %v334_v11, %v338_v13  ;;  %v1249_v53 = vcombine.low %v334_v11, %v338_v13 }
 0x184   :  { %v1297_v24 = vpop.f32.mrb[0].mxu0 }
 0x185   :  { %v272_v25 = vadd.f32 %v1297_v24, %v1198_v23  ;;  %v266_v27 = vpop.f32.mrb[1].mxu0 }
 0x186   :  { %v267_v28 = vadd.f32 %v1198_v23, %v266_v27  ;;  %v353_v27 = vld [vmem:[#allocation5 + $0x1f0] sm:$0xff] }
 0x187   :  { %v286_v31 = vmax.f32 %v272_v25, 0.0  ;;  %v349_v25 = vld [vmem:[#allocation5 + $0x1d0] sm:$0xff] }
 0x188   :  { %v285_v36 = vmax.f32 %v267_v28, 0.0  ;;  %v350_v28 = vld [vmem:[#allocation5 + $0x1d8] sm:$0xff]  ;;  %v1264_v34 = vcombine.high %v349_v25, %v353_v27 }
 0x189   :  { %v1266_v35 = vcombine.high %v350_v28, %v354_v30 }
 0x18a   :  { %v1531_v37 = vpack.c.bf16 %v286_v31, %v285_v36  ;;  %v1255_v31 = vcombine.low %v341_v18, %v345_v19  ;;  %v1263_v36 = vcombine.low %v349_v25, %v353_v27 }
 0x18c   :  { %750 = vmatmul.mubr.bf16.vlgmr.msra.gmra.mrb[0].mxu1 %v1531_v37  ;;  %803 = vmatmul.mubr.bf16.vlgmr.msra.gmra.mrb[4].mxu0 %v1531_v37 }
 0x18d   :  { %824 = vmatpush1.bf16.msra.mxu1 %v1207_v21  ;;  %877 = vmatpush1.bf16.msra.mxu0 %v1209_v52  ;;  %v346_v21 = vld [vmem:[#allocation5 + $0x1b8] sm:$0xff]  ;;  %v1247_v52 = vcombine.low %v333_v9, %v337_v10 }
 0x18e   :  { %825 = vmatprep.subr.bf16.mxu1 %v1216_v38  ;;  %878 = vmatprep.subr.bf16.mxu0 %v1218_v39  ;;  %v1258_v24 = vcombine.high %v342_v20, %v346_v21  ;;  %v1257_v32 = vcombine.low %v342_v20, %v346_v21  ;;  %v1265_v38 = vcombine.low %v350_v28, %v354_v30  ;;  %v1546_v39 = vld [vmem:[%s1664_s6] sm:$0xff]  ;;  %s1406_s6 = smov [#allocation7]  }
 0x18f   :  { %759 = vmatprep.mubr.bf16.mxu1 %v1404_v22  ;;  %812 = vmatprep.mubr.bf16.mxu0 %v1404_v22  ;;  %v1551_v41 = vrot.slane %v1546_v39, %v1477_v3  ;;  %v1562_v42 = vrot.slane %v1546_v39, %v371_v40  ;;  %s1187_s12 = sshll.u32 %s1406_s6, 4  ;;  %s1188_s12 = int_to_ptr.vmem [resolvable:$true] %s1187_s12 }
 0x190   :  { %v1300_v54 = vpop.f32.mrb[2].mxu0  ;;  %s1370_s13 = scalar_lea.vmem %s1188_s12, 256  ;;  %p1375_p3 = scmp.lt.s32.totalorder %s1188_s12, %s1188_s12 }
 0x191   :  { %v282_v55 = vadd.f32 %v1300_v54, %v1198_v23  ;;  %826 = vmatpush1.bf16.msra.mxu1 %v1215_v44  ;;  %879 = vmatpush1.bf16.msra.mxu0 %v1217_v45  ;;  %v276_v26 = vpop.f32.mrb[3].mxu0  ;;  %p1371_p2 = scmp.ne.s32.totalorder %s1188_s12, %s1370_s13  ;;  %p1376_p4 = scmp.lt.s32.totalorder %s1370_s13, %s1370_s13 }
 0x192   :  { %v277_v56 = vadd.f32 %v1198_v23, %v276_v26  ;;  %827 = vmatprep.subr.bf16.mxu1 %v1224_v46  ;;  %880 = vmatprep.subr.bf16.mxu0 %v1226_v47  ;;  %v1256_v23 = vcombine.high %v341_v18, %v345_v19 }
 0x193   :  { %v288_v60 = vmax.f32 %v282_v55, 0.0  ;;  %p1377_p5 = por %p1376_p4, %p1375_p3 }
 0x194   :  { %v287_v0 = vmax.f32 %v277_v56, 0.0 }
 0x195   :  { %828 = vmatpush1.bf16.msra.mxu1 %v1223_v29  ;;  %881 = vmatpush1.bf16.msra.mxu0 %v1225_v33  ;;  %v1405_v29 = vmov 1983009808   ;;  %p1378_p6 = pnand %p1377_p5, %p1371_p2 }
 0x196   :  { %v290_v6 = vpack.c.bf16 %v288_v60, %v287_v0  ;;  %829 = vmatprep.subr.bf16.mxu1 %v1232_v57  ;;  %882 = vmatprep.subr.bf16.mxu0 %v1234_v58  ;;  %v1092_v33 = vunpack.c.l.s4 %v1405_v29 }
 0x198   :  { %760 = vmatmul.mubr.bf16.gmra.mrb[4].mxu1 %v290_v6  ;;  %813 = vmatmul.mubr.bf16.gmra.mrb[8].mxu0 %v290_v6 }
 0x199   :  { %830 = vmatpush1.bf16.msra.mxu1 %v1231_v4  ;;  %883 = vmatpush1.bf16.msra.mxu0 %v1233_v5 }
 0x19a   :  { %831 = vmatprep.subr.bf16.mxu1 %v1240_v7  ;;  %884 = vmatprep.subr.bf16.mxu0 %v1242_v8  ;;  %v1093_v7 = vunpack.c.0.s8 %v1092_v33 }
 0x19b   :  { %855 = vmatprep.mubr.bf16.mxu1 %v1404_v22  ;;  %908 = vmatprep.mubr.bf16.mxu0 %v1404_v22 }
 0x19d   :  { %832 = vmatpush1.bf16.msra.mxu1 %v1239_v14  ;;  %885 = vmatpush1.bf16.msra.mxu0 %v1241_v15 }
 0x19e   :  { %833 = vmatprep.subr.bf16.mxu1 %v1248_v16  ;;  %886 = vmatprep.subr.bf16.mxu0 %v1250_v17  ;;  %v1573_v17 = vsub.s32 %v1093_v7, %v1471_v1 }
 0x1a1   :  { %834 = vmatpush1.bf16.msra.mxu1 %v1247_v52  ;;  %887 = vmatpush1.bf16.msra.mxu0 %v1249_v53 }
 0x1a2   :  { %835 = vmatprep.subr.bf16.mxu1 %v1256_v23  ;;  %888 = vmatprep.subr.bf16.mxu0 %v1258_v24 }
 0x1a5   :  { %836 = vmatpush1.bf16.msra.mxu1 %v1255_v31  ;;  %889 = vmatpush1.bf16.msra.mxu0 %v1257_v32 }
 0x1a6   :  { %837 = vmatprep.subr.bf16.mxu1 %v1264_v34  ;;  %890 = vmatprep.subr.bf16.mxu0 %v1266_v35 }
 0x1a9   :  { %838 = vmatpush1.bf16.msra.mxu1 %v1263_v36  ;;  %891 = vmatpush1.bf16.msra.mxu0 %v1265_v38 }
 0x1ac   :  { %856 = vmatmul.mubr.bf16.vlgmr.msra.gmra.mrb[8].mxu1 %v1531_v37  ;;  %909 = vmatmul.mubr.bf16.vlgmr.msra.gmra.mrb[12].mxu0 %v1531_v37  ;;  %v1555_v37 = vrot.slane %v1546_v39, %v1485_v12 }
 0x1ad   :  { %865 = vmatprep.mubr.bf16.mxu1 %v1404_v22  ;;  %918 = vmatprep.mubr.bf16.mxu0 %v1404_v22  ;;  %v1559_v22 = vrot.slane %v1546_v39, %v1474_v2 }
 0x1b4   :  { %866 = vmatmul.mubr.bf16.gmra.mrb[12].mxu1 %v290_v6  ;;  %919 = vmatmul.mubr.bf16.gmra.mrb[16].mxu0 %v290_v6 }
 0x25f   :  { %v751_v43 = vpop.f32.mrb[0].mxu1  ;;  %v804_v44 = vpop.f32.mrb[4].mxu0 }
 0x260   :  { %v752_v45 = vadd.f32 %v751_v43, %v1551_v41  ;;  %v805_v46 = vadd.f32 %v804_v44, %v1555_v37  ;;  %v753_v47 = vpop.f32.mrb[1].mxu1  ;;  %v806_v3 = vpop.f32.mrb[5].mxu0 }
 0x261   :  { %v754_v48 = vadd.f32 %v753_v47, %v1559_v22  ;;  %v807_v12 = vadd.f32 %v806_v3, %v1562_v42  ;;  %v755_v49 = vpop.f32.mrb[2].mxu1  ;;  %v808_v50 = vpop.f32.mrb[6].mxu0 }
 0x262   :  { %v756_v2 = vadd.f32 %v755_v49, %v1551_v41  ;;  %v809_v51 = vadd.f32 %v808_v50, %v1555_v37  ;;  %v757_v54 = vpop.f32.mrb[3].mxu1  ;;  %v810_v55 = vpop.f32.mrb[7].mxu0  ;;  %v929_v57 = vmax.f32 %v752_v45, 0.0  ;;  %v931_v58 = vmax.f32 %v805_v46, 0.0 }
 0x263   :  { %v758_v26 = vadd.f32 %v757_v54, %v1559_v22  ;;  %v811_v56 = vadd.f32 %v810_v55, %v1562_v42  ;;  %v930_v61 = vmax.f32 %v754_v48, 0.0  ;;  %v932_v62 = vmax.f32 %v807_v12, 0.0 }
 0x264   :  { %v937_v59 = vmax.f32 %v756_v2, 0.0  ;;  %v939_v60 = vmax.f32 %v809_v51, 0.0 }
 0x265   :  { %v938_v63 = vmax.f32 %v758_v26, 0.0  ;;  %v940_v0 = vmax.f32 %v811_v56, 0.0 }
 0x266   :  { %v961_v4 = vmax.f32 %v929_v57, %v937_v59  ;;  %v975_v5 = vmax.f32 %v931_v58, %v939_v60 }
 0x267   :  { %v968_v6 = vmax.f32 %v930_v61, %v938_v63  ;;  %v982_v8 = vmax.f32 %v932_v62, %v940_v0 }
 0x268   :  { %v962_v9 = vrot.slane %v961_v4, 4  ;;  %v976_v10 = vrot.slane %v975_v5, 4 }
 0x269   :  { %v969_v11 = vrot.slane %v968_v6, 4  ;;  %v983_v13 = vrot.slane %v982_v8, 4 }
 0x26a   :  { %v963_v14 = vmax.f32 %v961_v4, %v962_v9  ;;  %v977_v15 = vmax.f32 %v975_v5, %v976_v10 }
 0x26b   :  { %v970_v16 = vmax.f32 %v968_v6, %v969_v11  ;;  %v984_v18 = vmax.f32 %v982_v8, %v983_v13  ;;  %v761_v19 = vpop.f32.mrb[4].mxu1  ;;  %v814_v20 = vpop.f32.mrb[8].mxu0  ;;  %v383_v11 = vsub.s32 6, %v1471_v1  ;;  %v379_v13 = vsub.s32 5, %v1471_v1 }
 0x26c   :  { %v964_v21 = vrot.slane %v963_v14, 2  ;;  %v978_v52 = vrot.slane %v977_v15, 2  ;;  %v762_v53 = vadd.f32 %v761_v19, %v1551_v41  ;;  %v815_v23 = vadd.f32 %v814_v20, %v1555_v37  ;;  %v763_v24 = vpop.f32.mrb[5].mxu1  ;;  %v816_v25 = vpop.f32.mrb[9].mxu0 }
 0x26d   :  { %v971_v27 = vrot.slane %v970_v16, 2  ;;  %v985_v28 = vrot.slane %v984_v18, 2  ;;  %v764_v30 = vadd.f32 %v763_v24, %v1559_v22  ;;  %v817_v31 = vadd.f32 %v816_v25, %v1562_v42  ;;  %v765_v32 = vpop.f32.mrb[6].mxu1  ;;  %v818_v34 = vpop.f32.mrb[10].mxu0 }
 0x26e   :  { %v965_v35 = vmax.f32 %v963_v14, %v964_v21  ;;  %v979_v36 = vmax.f32 %v977_v15, %v978_v52  ;;  %v945_v38 = vmax.f32 %v762_v53, 0.0  ;;  %v947_v40 = vmax.f32 %v815_v23, 0.0  ;;  %v767_v43 = vpop.f32.mrb[7].mxu1  ;;  %v820_v44 = vpop.f32.mrb[11].mxu0 }
 0x26f   :  { %v972_v45 = vmax.f32 %v970_v16, %v971_v27  ;;  %v986_v46 = vmax.f32 %v984_v18, %v985_v28  ;;  %v946_v47 = vmax.f32 %v764_v30, 0.0  ;;  %v948_v3 = vmax.f32 %v817_v31, 0.0 }
 0x270   :  { %v966_v48 = vrot.slane %v965_v35, 1  ;;  %v980_v12 = vrot.slane %v979_v36, 1  ;;  %v766_v49 = vadd.f32 %v765_v32, %v1551_v41  ;;  %v819_v50 = vadd.f32 %v818_v34, %v1555_v37 }
 0x271   :  { %v973_v2 = vrot.slane %v972_v45, 1  ;;  %v987_v51 = vrot.slane %v986_v46, 1  ;;  %v768_v54 = vadd.f32 %v767_v43, %v1559_v22  ;;  %v821_v55 = vadd.f32 %v820_v44, %v1562_v42 }
 0x272   :  { %v967_v26 = vmax.f32 %v965_v35, %v966_v48  ;;  %v981_v29 = vmax.f32 %v979_v36, %v980_v12  ;;  %v953_v33 = vmax.f32 %v766_v49, 0.0  ;;  %v955_v56 = vmax.f32 %v819_v50, 0.0 }
 0x273   :  { %v974_v57 = vmax.f32 %v972_v45, %v973_v2  ;;  %v988_v58 = vmax.f32 %v986_v46, %v987_v51  ;;  %v954_v59 = vmax.f32 %v768_v54, 0.0  ;;  %v956_v60 = vmax.f32 %v821_v55, 0.0 }
 0x274   :  { %v1017_v61 = vmax.f32 %v945_v38, %v953_v33  ;;  %v1031_v62 = vmax.f32 %v947_v40, %v955_v56  ;;  %v375_v22 = vsub.s32 4, %v1471_v1  ;;  %v387_v18 = vsub.s32 7, %v1471_v1 }
 0x275   :  { %v1089_v63 = vcombine.low %v967_v26, %v974_v57  ;;  %v1090_v41 = vcombine.low %v981_v29, %v988_v58  ;;  %v1024_v0 = vmax.f32 %v946_v47, %v954_v59  ;;  %v1038_v37 = vmax.f32 %v948_v3, %v956_v60 }
 0x276   :  { %v1018_v4 = vrot.slane %v1017_v61, 4  ;;  %v1032_v5 = vrot.slane %v1031_v62, 4  ;;  %v1596_v24 = vrot.slane %v1546_v39, %v375_v22  ;;  %v1599_v25 = vrot.slane %v1546_v39, %v383_v11 }
 0x277   :  { %v1585_v42 = vrot.slane %v1089_v63, %v1573_v17  ;;  %v1588_v6 = vrot.slane %v1090_v41, %v1573_v17  ;;  %v1025_v7 = vrot.slane %v1024_v0, 4  ;;  %v1039_v8 = vrot.slane %v1038_v37, 4 }
 0x278   :  { %v1019_v9 = vmax.f32 %v1017_v61, %v1018_v4  ;;  %v1033_v10 = vmax.f32 %v1031_v62, %v1032_v5  ;;  %v1602_v30 = vrot.slane %v1546_v39, %v379_v13  ;;  %v1605_v31 = vrot.slane %v1546_v39, %v387_v18 }
 0x279   :  { %v1105_v14 = vcombine.low %v1585_v42, %v1588_v6  ;;  %v1026_v15 = vmax.f32 %v1024_v0, %v1025_v7  ;;  %v1040_v16 = vmax.f32 %v1038_v37, %v1039_v8 }
 0x27a   :  { %v1020_v19 = vrot.slane %v1019_v9, 2  ;;  %v1034_v20 = vrot.slane %v1033_v10, 2 }
 0x27b   :  { %v1027_v21 = vrot.slane %v1026_v15, 2  ;;  %v1041_v52 = vrot.slane %v1040_v16, 2 }
 0x27c   :  { %v1021_v53 = vmax.f32 %v1019_v9, %v1020_v19  ;;  %v1035_v23 = vmax.f32 %v1033_v10, %v1034_v20 }
 0x27d   :  { %v1028_v27 = vmax.f32 %v1026_v15, %v1027_v21  ;;  %v1042_v28 = vmax.f32 %v1040_v16, %v1041_v52 }
 0x27e   :  { %v1022_v1 = vrot.slane %v1021_v53, 1  ;;  %v1036_v32 = vrot.slane %v1035_v23, 1 }
 0x27f   :  { %v1029_v34 = vrot.slane %v1028_v27, 1  ;;  %v1043_v35 = vrot.slane %v1042_v28, 1  ;;  %v857_v36 = vpop.f32.mrb[8].mxu1  ;;  %v910_v38 = vpop.f32.mrb[12].mxu0 }
 0x280   :  { %v1023_v40 = vmax.f32 %v1021_v53, %v1022_v1  ;;  %v1037_v43 = vmax.f32 %v1035_v23, %v1036_v32  ;;  %v858_v44 = vadd.f32 %v857_v36, %v1596_v24  ;;  %v911_v45 = vadd.f32 %v910_v38, %v1599_v25  ;;  %v859_v46 = vpop.f32.mrb[9].mxu1  ;;  %v912_v47 = vpop.f32.mrb[13].mxu0 }
 0x281   :  { %v1030_v3 = vmax.f32 %v1028_v27, %v1029_v34  ;;  %v1044_v48 = vmax.f32 %v1042_v28, %v1043_v35  ;;  %v860_v12 = vadd.f32 %v859_v46, %v1602_v30  ;;  %v913_v39 = vadd.f32 %v912_v47, %v1605_v31  ;;  %v861_v49 = vpop.f32.mrb[10].mxu1  ;;  %v914_v50 = vpop.f32.mrb[14].mxu0 }
 0x282   :  { %v862_v2 = vadd.f32 %v861_v49, %v1596_v24  ;;  %v915_v51 = vadd.f32 %v914_v50, %v1599_v25  ;;  %v863_v54 = vpop.f32.mrb[11].mxu1  ;;  %v916_v55 = vpop.f32.mrb[15].mxu0  ;;  %v933_v33 = vmax.f32 %v858_v44, 0.0  ;;  %v935_v56 = vmax.f32 %v911_v45, 0.0 }
 0x283   :  { %v1123_v26 = vcombine.low %v1023_v40, %v1030_v3  ;;  %v1124_v29 = vcombine.low %v1037_v43, %v1044_v48  ;;  %v864_v59 = vadd.f32 %v863_v54, %v1602_v30  ;;  %v917_v60 = vadd.f32 %v916_v55, %v1605_v31 }
 0x284   :  { %v941_v57 = vmax.f32 %v862_v2, 0.0  ;;  %v943_v58 = vmax.f32 %v915_v51, 0.0  ;;  %v934_v63 = vmax.f32 %v860_v12, 0.0  ;;  %v936_v41 = vmax.f32 %v913_v39, 0.0 }
 0x285   :  { %v1616_v61 = vrot.slane %v1123_v26, %v1573_v17  ;;  %v1619_v62 = vrot.slane %v1124_v29, %v1573_v17  ;;  %v942_v4 = vmax.f32 %v864_v59, 0.0  ;;  %v944_v5 = vmax.f32 %v917_v60, 0.0 }
 0x286   :  { %v989_v0 = vmax.f32 %v933_v33, %v941_v57  ;;  %v1003_v37 = vmax.f32 %v935_v56, %v943_v58 }
 0x287   :  { %v867_v22 = vpop.f32.mrb[12].mxu1  ;;  %v920_v7 = vpop.f32.mrb[16].mxu0  ;;  %v1139_v8 = vcombine.low %v1616_v61, %v1619_v62  ;;  %v996_v11 = vmax.f32 %v934_v63, %v942_v4  ;;  %v1010_v13 = vmax.f32 %v936_v41, %v944_v5 }
 0x288   :  { %v990_v9 = vrot.slane %v989_v0, 4  ;;  %v1004_v10 = vrot.slane %v1003_v37, 4  ;;  %v869_v15 = vpop.f32.mrb[13].mxu1  ;;  %v922_v16 = vpop.f32.mrb[17].mxu0  ;;  %v868_v18 = vadd.f32 %v867_v22, %v1596_v24  ;;  %v921_v19 = vadd.f32 %v920_v7, %v1599_v25 }
 0x289   :  { %v870_v20 = vadd.f32 %v869_v15, %v1602_v30  ;;  %v923_v21 = vadd.f32 %v922_v16, %v1605_v31  ;;  %v871_v52 = vpop.f32.mrb[14].mxu1  ;;  %v924_v53 = vpop.f32.mrb[18].mxu0  ;;  %v997_v28 = vrot.slane %v996_v11, 4  ;;  %v1011_v1 = vrot.slane %v1010_v13, 4 }
 0x28a   :  { %v991_v23 = vmax.f32 %v989_v0, %v990_v9  ;;  %v1005_v27 = vmax.f32 %v1003_v37, %v1004_v10  ;;  %v873_v32 = vpop.f32.mrb[15].mxu1  ;;  %v926_v34 = vpop.f32.mrb[19].mxu0  ;;  %v949_v35 = vmax.f32 %v868_v18, 0.0  ;;  %v951_v36 = vmax.f32 %v921_v19, 0.0 }
 0x28b   :  { %v950_v38 = vmax.f32 %v870_v20, 0.0  ;;  %v952_v40 = vmax.f32 %v923_v21, 0.0  ;;  %v998_v45 = vmax.f32 %v996_v11, %v997_v28  ;;  %v1012_v46 = vmax.f32 %v1010_v13, %v1011_v1 }
 0x28c   :  { %v992_v43 = vrot.slane %v991_v23, 2  ;;  %v1006_v44 = vrot.slane %v1005_v27, 2  ;;  %v872_v47 = vadd.f32 %v871_v52, %v1596_v24  ;;  %v925_v3 = vadd.f32 %v924_v53, %v1599_v25 }
 0x28d   :  { %v874_v48 = vadd.f32 %v873_v32, %v1602_v30  ;;  %v927_v12 = vadd.f32 %v926_v34, %v1605_v31  ;;  %v999_v50 = vrot.slane %v998_v45, 2  ;;  %v1013_v2 = vrot.slane %v1012_v46, 2 }
 0x28e   :  { %v993_v39 = vmax.f32 %v991_v23, %v992_v43  ;;  %v1007_v49 = vmax.f32 %v1005_v27, %v1006_v44  ;;  %v957_v51 = vmax.f32 %v872_v47, 0.0  ;;  %v959_v54 = vmax.f32 %v925_v3, 0.0 }
 0x28f   :  { %v958_v55 = vmax.f32 %v874_v48, 0.0  ;;  %v960_v26 = vmax.f32 %v927_v12, 0.0  ;;  %v1000_v56 = vmax.f32 %v998_v45, %v999_v50  ;;  %v1014_v57 = vmax.f32 %v1012_v46, %v1013_v2 }
 0x290   :  { %v994_v29 = vrot.slane %v993_v39, 1  ;;  %v1008_v33 = vrot.slane %v1007_v49, 1  ;;  %v1045_v58 = vmax.f32 %v949_v35, %v957_v51  ;;  %v1059_v24 = vmax.f32 %v951_v36, %v959_v54 }
 0x291   :  { %v1052_v59 = vmax.f32 %v950_v38, %v958_v55  ;;  %v1066_v25 = vmax.f32 %v952_v40, %v960_v26  ;;  %v1001_v61 = vrot.slane %v1000_v56, 1  ;;  %v1015_v31 = vrot.slane %v1014_v57, 1 }
 0x292   :  { %v995_v60 = vmax.f32 %v993_v39, %v994_v29  ;;  %v1009_v30 = vmax.f32 %v1007_v49, %v1008_v33  ;;  %v1046_v62 = vrot.slane %v1045_v58, 4  ;;  %v1060_v63 = vrot.slane %v1059_v24, 4 }
 0x293   :  { %v1053_v41 = vrot.slane %v1052_v59, 4  ;;  %v1067_v0 = vrot.slane %v1066_v25, 4  ;;  %v1002_v37 = vmax.f32 %v1000_v56, %v1001_v61  ;;  %v1016_v4 = vmax.f32 %v1014_v57, %v1015_v31 }
 0x294   :  { %v1161_v5 = vrot.slane %v1139_v8, 7  ;;  %v1047_v22 = vmax.f32 %v1045_v58, %v1046_v62  ;;  %v1061_v7 = vmax.f32 %v1059_v24, %v1060_v63 }
 0x295   :  { %v1054_v9 = vmax.f32 %v1052_v59, %v1053_v41  ;;  %v1068_v10 = vmax.f32 %v1066_v25, %v1067_v0  ;;  %v1106_v11 = vcombine.low %v995_v60, %v1002_v37  ;;  %v1107_v13 = vcombine.low %v1009_v30, %v1016_v4 }
 0x296   :  { %v1163_v15 = vsel %vm1162_vm1, %v1161_v5, %v1105_v14  ;;  %v1048_v16 = vrot.slane %v1047_v22, 2  ;;  %v1062_v18 = vrot.slane %v1061_v7, 2 }
 0x297   :  { %v1055_v19 = vrot.slane %v1054_v9, 2  ;;  %v1069_v20 = vrot.slane %v1068_v10, 2  ;;  %v1114_v21 = vrot.slane %v1106_v11, %v1573_v17  ;;  %v1121_v8 = vrot.slane %v1107_v13, %v1573_v17 }
 0x298   :  { %v1165_v52 = vsel %vm1164_vm2, %v1161_v5, %v1163_v15  ;;  %v1049_v53 = vmax.f32 %v1047_v22, %v1048_v16  ;;  %v1063_v23 = vmax.f32 %v1061_v7, %v1062_v18 }
 0x299   :  { %v1056_v27 = vmax.f32 %v1054_v9, %v1055_v19  ;;  %v1070_v28 = vmax.f32 %v1068_v10, %v1069_v20  ;;  %v1122_v1 = vcombine.low %v1114_v21, %v1121_v8  ;;  %v1167_v42 = vsel %vm1166_vm3, %v1161_v5, %v1165_v52 }
 0x29a   :  { %v1050_v6 = vrot.slane %v1049_v53, 1  ;;  %v1064_v14 = vrot.slane %v1063_v23, 1  ;;  %v1169_v35 = vsel %vm1168_vm4, %v1161_v5, %v1167_v42 }
 0x29b   :  { %v1057_v32 = vrot.slane %v1056_v27, 1  ;;  %v1071_v34 = vrot.slane %v1070_v28, 1  ;;  %1179 = vst [vmem:[#allocation7] sm:$0xff] %v1169_v35 }
 0x29c   :  { %v1051_v36 = vmax.f32 %v1049_v53, %v1050_v6  ;;  %v1065_v38 = vmax.f32 %v1063_v23, %v1064_v14 }
 0x29d   :  { %v1058_v40 = vmax.f32 %v1056_v27, %v1057_v32  ;;  %v1072_v43 = vmax.f32 %v1070_v28, %v1071_v34 }
 0x29f   :  { %v1140_v44 = vcombine.low %v1051_v36, %v1058_v40  ;;  %v1141_v45 = vcombine.low %v1065_v38, %v1072_v43 }
 0x2a1   :  { %v1148_v46 = vrot.slane %v1140_v44, %v1573_v17  ;;  %v1155_v47 = vrot.slane %v1141_v45, %v1573_v17 }
 0x2a3   :  { %v1156_v3 = vcombine.low %v1148_v46, %v1155_v47 }
 0x2a5   :  { %v1172_v48 = vrot.slane %v1156_v3, 7 }
 0x2a7   :  { %v1173_v12 = vsel %vm1162_vm1, %v1172_v48, %v1122_v1 }
 0x2a8   :  { %v1174_v39 = vsel %vm1164_vm2, %v1172_v48, %v1173_v12 }
 0x2a9   :  { %v1175_v49 = vsel %vm1166_vm3, %v1172_v48, %v1174_v39 }
 0x2aa   :  { %v1176_v50 = vsel %vm1168_vm4, %v1172_v48, %v1175_v49 }
 0x2ab   :  { %1180 = vst [vmem:[#allocation7 + $0x8] sm:$0xff] %v1176_v50 }
 0x2ac   :  { %1381 = shalt.err (!%p1378_p6)
}
 0x2ad   :  { %s1382_s16 = scalar_lea.hbm %s1665_s7, 256 }
 0x2ae   :  { %p1383_p7 = scmp.ne.s32.totalorder %s1665_s7, %s1382_s16  ;;  %p1386_p8 = scmp.lt.u32.totalorder %s1382_s16, %s1665_s7 }
 0x2b0   :  { %p1388_p9 = pnand %p1386_p8, %p1383_p7 }
 0x2b2   :  { %1391 = shalt.err (!%p1388_p9)
}
 0x2b3   :  { %1190 = dma.vmem_to_hbm [thread:$0]  %s1188_s12, 256, %s1665_s7, [#allocation4]  }
 0x2b4   :  { %1396 = dma.done.wait [#allocation4], 256  }
 0x2b5   :  { %1397 = vsyncadd [#allocation4], 4294967040 }
 0x2b6   :  { %1194 = vsyncpa [#allocation3], 1 }
 0x2b7   :  { %1195 = vsyncpa [#allocation6], 1 }
 0x2b8   :  { %1196 = vsyncpa [#allocation4], 1 }

</bundles_post_ra>
